<compile_context>
chip_gen: v7x
topology: tpu7x:2x2x1
jax: 0.10.0
libtpu: 0.0.40
codegen_flags: <defaults>
</compile_context>

<pallas_src>
import math
from functools import partial

import numpy as np
import jax
import jax.numpy as jnp
from jax.experimental import pallas as pl
from jax.experimental.pallas import tpu as pltpu


def _round_up(x, m):
    return ((x + m - 1) // m) * m


# ---------------------------------------------------------------------------
# Kernel: one batch tile -> numerical (VPU/XLU, f32) + categorical (MXU, bf16)
# ---------------------------------------------------------------------------
def _recon_kernel(h_ref, wnum_ref, wcat_ref, bcat_ref, onum_ref, ocat_ref,
                  *, d_num, n_cat):
    # h_ref:    (TB, T, D)        f32   pipelined batch tile
    # wnum_ref: (d_num, D)        f32   resident
    # wcat_ref: (n_cat, D, C_pad) bf16  resident block-structured cat weights
    # bcat_ref: (1, C_pad)        f32   resident concatenated biases
    # onum_ref: (TB, d_num)       f32
    # ocat_ref: (TB, C_pad)       f32   lane-dense categorical logits slab
    h = h_ref[...]

    # ---- numerical branch: elementwise mul + lane reduce, exact f32 --------
    h_num = h[:, :d_num, :]                                    # (TB, d_num, D)
    onum_ref[...] = jnp.sum(h_num * wnum_ref[...][None, :, :], axis=-1)

    # ---- categorical branch: per-token bf16 MXU matmuls, f32 accumulation --
    acc = jnp.zeros(ocat_ref.shape, jnp.float32)
    for i in range(n_cat):                                     # n_cat is small/static
        hi = h[:, d_num + i, :].astype(jnp.bfloat16)           # (TB, D)
        acc = acc + jnp.dot(hi, wcat_ref[i],                   # (D, C_pad) bf16
                            preferred_element_type=jnp.float32)
    ocat_ref[...] = acc + bcat_ref[...]                        # f32 bias add (VPU)


# ---------------------------------------------------------------------------
# VMEM estimate (padded to (8,128) tiles) used for tile selection + limit
# ---------------------------------------------------------------------------
def _vmem_estimate(TB, T, D, d_num, n_cat, C_pad):
    lane = lambda n: _round_up(max(n, 1), 128)
    sub = lambda n: _round_up(max(n, 1), 8)
    h_b = 2 * TB * sub(T) * lane(D) * 4          # double-buffered h tile
    wnum = sub(d_num) * lane(D) * 4              # resident (single-buffered)
    wcat = n_cat * sub(D) * lane(C_pad) * 2      # bf16 slab
    bias = 8 * lane(C_pad) * 4
    o_num = 2 * TB * lane(d_num) * 4
    o_cat = 2 * TB * lane(C_pad) * 4
    return h_b + wnum + wcat + bias + o_num + o_cat


# ---------------------------------------------------------------------------
# pallas_call wrapper
# ---------------------------------------------------------------------------
def recon_forward(h, w_num, w_cat_slab, b_cat_row, *, batch_tile=256,
                  vmem_budget_bytes=48 * 2**20):
    B, T, D = h.shape
    d_num = w_num.shape[0]
    n_cat = w_cat_slab.shape[0]
    C_pad = w_cat_slab.shape[2]
    assert T == d_num + n_cat

    # ---- batch tile selection ----------------------------------------------
    TB = min(batch_tile, B)
    if B >= 16:
        # guarantee >= 2 grid steps so "parallel" can shard across v7x cores
        TB = min(TB, _round_up(pl.cdiv(B, 2), 8))
    if TB < B:
        TB = _round_up(TB, 8)
    # shrink until the explicit VMEM budget is met (v7x: 64 MiB physical)
    while TB > 8 and _vmem_estimate(TB, T, D, d_num, n_cat, C_pad) > vmem_budget_bytes:
        TB = max(8, _round_up(TB // 2, 8))
    grid = (pl.cdiv(B, TB),)

    est = _vmem_estimate(TB, T, D, d_num, n_cat, C_pad)
    vmem_limit = int(min(64 * 2**20, max(32 * 2**20, int(est * 1.5))))

    kernel = partial(_recon_kernel, d_num=d_num, n_cat=n_cat)

    cost = pl.CostEstimate(
        flops=2 * B * n_cat * D * C_pad + 2 * B * d_num * D,
        transcendentals=0,
        bytes_accessed=(B * T * D * 4                 # h
                        + d_num * D * 4               # numerical weight
                        + n_cat * D * C_pad * 2       # bf16 cat slab
                        + C_pad * 4                   # bias
                        + B * (d_num + C_pad) * 4))   # outputs

    def build_call(single_buffer_params):
        def resident(shape, index_map):
            # Constant index_map -> single buffer saves VMEM; only a perf hint.
            if single_buffer_params:
                return pl.BlockSpec(shape, index_map, pipeline_mode=pl.Buffered(1))
            return pl.BlockSpec(shape, index_map)

        in_specs = [
            pl.BlockSpec((TB, T, D), lambda b: (b, 0, 0)),          # h (pipelined)
            resident((d_num, D), lambda b: (0, 0)),                 # numerical weight
            resident((n_cat, D, C_pad), lambda b: (0, 0, 0)),       # bf16 cat slab
            resident((1, C_pad), lambda b: (0, 0)),                 # bias row
        ]
        out_specs = [
            pl.BlockSpec((TB, d_num), lambda b: (b, 0)),
            pl.BlockSpec((TB, C_pad), lambda b: (b, 0)),
        ]
        return pl.pallas_call(
            kernel,
            out_shape=(jax.ShapeDtypeStruct((B, d_num), jnp.float32),
                       jax.ShapeDtypeStruct((B, C_pad), jnp.float32)),
            grid=grid,
            in_specs=in_specs,
            out_specs=out_specs,
            compiler_params=pltpu.CompilerParams(
                dimension_semantics=("parallel",),   # megacore shard on v7x
                vmem_limit_bytes=vmem_limit),
            cost_estimate=cost,
        )

    try:
        return build_call(True)(h, w_num, w_cat_slab, b_cat_row)
    except Exception:
        # pl.Buffered(1) single-buffering is an optimization only; fall back to
        # default double-buffering if this JAX build rejects pipeline_mode here.
        return build_call(False)(h, w_num, w_cat_slab, b_cat_row)


# ---------------------------------------------------------------------------
# Module-like wrapper (parameter init mirrors the PyTorch __init__)
# ---------------------------------------------------------------------------
def _xavier_uniform(key, shape, gain):
    fan_out, fan_in = shape
    bound = gain * math.sqrt(6.0 / (fan_in + fan_out))
    return jax.random.uniform(key, shape, jnp.float32, -bound, bound)


class ReconstructorPallas:
    def __init__(self, d_numerical, cat_cardinalities, d_token, key, *, batch_tile=256):
        # TODO(synk): handle the degenerate d_numerical == 0 / empty-cat cases
        # (trivial pure-JAX fallback); the fused kernel assumes both present.
        assert d_numerical > 0 and len(cat_cardinalities) > 0
        self.d_numerical = d_numerical
        self.cat_cardinalities = dict(cat_cardinalities)
        self.d_token = d_token
        self.batch_tile = batch_tile

        gain = 1.0 / math.sqrt(2.0)
        n_cat = len(self.cat_cardinalities)
        keys = jax.random.split(key, 1 + 2 * n_cat)

        # Original-shape parameters (f32, kept for reference checks / export).
        self.weight = _xavier_uniform(keys[0], (d_numerical, d_token), gain)
        self.cat_w = {}   # (cat_dim, d_token) PyTorch Linear layout
        self.cat_b = {}   # (cat_dim,)
        for i, (name, cdim) in enumerate(self.cat_cardinalities.items()):
            w = _xavier_uniform(keys[1 + 2 * i], (cdim, d_token), gain)
            bound = 1.0 / math.sqrt(d_token)   # PyTorch default Linear bias init
            b = jax.random.uniform(keys[2 + 2 * i], (cdim,), jnp.float32, -bound, bound)
            self.cat_w[name] = w
            self.cat_b[name] = b

        # --- block-structured categorical slab (built once with numpy) -------
        # Rows = (token i, dim d); columns = concatenated category logits,
        # padded to a multiple of 128 so the kernel output is lane-dense.
        D = d_token
        C_total = sum(self.cat_cardinalities.values())
        C_pad = max(128, _round_up(C_total, 128))

        wcat = np.zeros((n_cat, D, C_pad), np.float32)
        bcat = np.zeros((1, C_pad), np.float32)
        self.cat_col_offsets = {}
        off = 0
        for i, (name, cdim) in enumerate(self.cat_cardinalities.items()):
            wcat[i, :, off:off + cdim] = np.asarray(self.cat_w[name]).T
            bcat[0, off:off + cdim] = np.asarray(self.cat_b[name])
            self.cat_col_offsets[name] = (off, cdim)
            off += cdim

        # bf16 MXU operand (halves resident VMEM, native single-pass MXU);
        # bias stays f32 and is added to the f32 accumulator.
        self.w_cat_slab = jnp.asarray(wcat, dtype=jnp.bfloat16)
        self.b_cat_row = jnp.asarray(bcat, dtype=jnp.float32)
        self.C_pad = C_pad

    def __call__(self, h):
        # h: (B, d_numerical + n_cat, d_token); passed 3-D (no wrapper reshape).
        B, T, D = h.shape
        assert T == self.d_numerical + len(self.cat_cardinalities)
        assert D == self.d_token

        recon_x_num, cat_slab = recon_forward(
            h.astype(jnp.float32), self.weight, self.w_cat_slab, self.b_cat_row,
            batch_tile=self.batch_tile)

        recon_x_cat = {name: cat_slab[:, off:off + cdim]
                       for name, (off, cdim) in self.cat_col_offsets.items()}
        return recon_x_num, recon_x_cat


# ---------------------------------------------------------------------------
# Demo / correctness check
# ---------------------------------------------------------------------------
if __name__ == "__main__":
    key = jax.random.PRNGKey(0)
    k_param, k_input = jax.random.split(key)

    B = 16                       # >= 16 so the grid has 2 steps (megacore path)
    d_numerical = 6
    cat_cardinalities = {"cat_a": 5, "cat_b": 7, "cat_c": 3}
    d_token = 32
    T = d_numerical + len(cat_cardinalities)

    model = ReconstructorPallas(d_numerical, cat_cardinalities, d_token, k_param)
    h = jax.random.normal(k_input, (B, T, d_token), dtype=jnp.float32)

    recon_num, recon_cat = model(h)
    recon_num = jax.block_until_ready(recon_num)
    recon_cat = {k: jax.block_until_ready(v) for k, v in recon_cat.items()}

    # Pure-JAX reference (mirrors the PyTorch forward).
    ref_num = jnp.sum(h[:, :d_numerical] * model.weight[None, :, :], axis=-1)
    assert recon_num.shape == (B, d_numerical)
    # Numerical branch is computed in exact f32 on the VPU.
    assert jnp.allclose(recon_num, ref_num, atol=1e-4, rtol=1e-4), "numerical recon mismatch"

    for i, (name, cdim) in enumerate(cat_cardinalities.items()):
        ref_cat = h[:, d_numerical + i] @ model.cat_w[name].T + model.cat_b[name][None, :]
        assert recon_cat[name].shape == (B, cdim)
        # Categorical branch runs on the bf16 MXU with f32 accumulation.
        assert jnp.allclose(recon_cat[name], ref_cat, atol=3e-2, rtol=3e-2), (
            f"cat recon mismatch: {name}")

    print("KERNEL_OK")
</pallas_src>

<mosaic_0001>
module attributes {stable_mosaic.version = 11 : i64} {
  func.func @_recon_kernel(%arg0: i32, %arg1: memref<8x9x32xf32, #tpu.memory_space<vmem>>, %arg2: memref<6x32xf32, #tpu.memory_space<vmem>>, %arg3: memref<3x32x128xbf16, #tpu.memory_space<vmem>>, %arg4: memref<1x128xf32, #tpu.memory_space<vmem>>, %arg5: memref<8x6xf32, #tpu.memory_space<vmem>>, %arg6: memref<8x128xf32, #tpu.memory_space<vmem>>) attributes {dimension_semantics = [#tpu.dimension_semantics<parallel>], iteration_bounds = array<i64: 2>, scalar_prefetch = 0 : i64, scratch_operands = 0 : i64, tpu.core_type = #tpu.core_type<tc>, window_params = [{transform_indices = @transform_0, window_bounds = array<i64: 8, 9, 32>}, {pipeline_mode = #tpu.pipeline_mode<synchronous>, transform_indices = @transform_1, window_bounds = array<i64: 6, 32>}, {pipeline_mode = #tpu.pipeline_mode<synchronous>, transform_indices = @transform_2, window_bounds = array<i64: 3, 32, 128>}, {pipeline_mode = #tpu.pipeline_mode<synchronous>, transform_indices = @transform_3, window_bounds = array<i64: 1, 128>}, {transform_indices = @transform_4, window_bounds = array<i64: 8, 6>}, {transform_indices = @transform_5, window_bounds = array<i64: 8, 128>}]} {
    %c0 = arith.constant 0 : index
    %c0_0 = arith.constant 0 : index
    %c0_1 = arith.constant 0 : index
    %0 = vector.load %arg1[%c0, %c0_0, %c0_1] : memref<8x9x32xf32, #tpu.memory_space<vmem>>, vector<8x9x32xf32>
    %1 = vector.extract_strided_slice %0 {offsets = [0, 0, 0], sizes = [8, 6, 32], strides = [1, 1, 1]} : vector<8x9x32xf32> to vector<8x6x32xf32>
    %c0_2 = arith.constant 0 : index
    %c0_3 = arith.constant 0 : index
    %2 = vector.load %arg2[%c0_2, %c0_3] : memref<6x32xf32, #tpu.memory_space<vmem>>, vector<6x32xf32>
    %3 = vector.shape_cast %2 : vector<6x32xf32> to vector<1x6x32xf32>
    %4 = vector.broadcast %3 : vector<1x6x32xf32> to vector<8x6x32xf32>
    %5 = arith.mulf %1, %4 : vector<8x6x32xf32>
    %cst = arith.constant dense<0.000000e+00> : vector<8x6xf32>
    %6 = vector.multi_reduction <add>, %5, %cst [2] : vector<8x6x32xf32> to vector<8x6xf32>
    %c0_4 = arith.constant 0 : index
    %c0_5 = arith.constant 0 : index
    %7 = vector.load %arg5[%c0_4, %c0_5] : memref<8x6xf32, #tpu.memory_space<vmem>>, vector<8x6xf32>
    tpu.vector_store %arg5[%c0_4, %c0_5], %6 {strides = array<i32>} : memref<8x6xf32, #tpu.memory_space<vmem>>, vector<8x6xf32>,
    %cst_6 = arith.constant 0.000000e+00 : f32
    %8 = vector.broadcast %cst_6 : f32 to vector<8x128xf32>
    %9 = vector.extract_strided_slice %0 {offsets = [0, 6, 0], sizes = [8, 1, 32], strides = [1, 1, 1]} : vector<8x9x32xf32> to vector<8x1x32xf32>
    %10 = vector.shape_cast %9 : vector<8x1x32xf32> to vector<8x32xf32>
    %11 = arith.truncf %10 : vector<8x32xf32> to vector<8x32xbf16>
    %c0_7 = arith.constant 0 : index
    %c0_8 = arith.constant 0 : index
    %c0_9 = arith.constant 0 : index
    %12 = vector.load %arg3[%c0_7, %c0_8, %c0_9] : memref<3x32x128xbf16, #tpu.memory_space<vmem>>, vector<1x32x128xbf16>
    %13 = vector.shape_cast %12 : vector<1x32x128xbf16> to vector<32x128xbf16>
    %cst_10 = arith.constant dense<0.000000e+00> : vector<8x128xf32>
    %14 = tpu.matmul %11, %13, %cst_10 {dimension_numbers = #tpu.dot_dimension_numbers<[1], [0], [0], [1], [0, 0, 1, 1], [], []>} : vector<8x32xbf16>, vector<32x128xbf16>, vector<8x128xf32> -> vector<8x128xf32>
    %15 = arith.addf %8, %14 : vector<8x128xf32>
    %16 = vector.extract_strided_slice %0 {offsets = [0, 7, 0], sizes = [8, 1, 32], strides = [1, 1, 1]} : vector<8x9x32xf32> to vector<8x1x32xf32>
    %17 = vector.shape_cast %16 : vector<8x1x32xf32> to vector<8x32xf32>
    %18 = arith.truncf %17 : vector<8x32xf32> to vector<8x32xbf16>
    %c1 = arith.constant 1 : index
    %c0_11 = arith.constant 0 : index
    %c0_12 = arith.constant 0 : index
    %19 = vector.load %arg3[%c1, %c0_11, %c0_12] : memref<3x32x128xbf16, #tpu.memory_space<vmem>>, vector<1x32x128xbf16>
    %20 = vector.shape_cast %19 : vector<1x32x128xbf16> to vector<32x128xbf16>
    %cst_13 = arith.constant dense<0.000000e+00> : vector<8x128xf32>
    %21 = tpu.matmul %18, %20, %cst_13 {dimension_numbers = #tpu.dot_dimension_numbers<[1], [0], [0], [1], [0, 0, 1, 1], [], []>} : vector<8x32xbf16>, vector<32x128xbf16>, vector<8x128xf32> -> vector<8x128xf32>
    %22 = arith.addf %15, %21 : vector<8x128xf32>
    %23 = vector.extract_strided_slice %0 {offsets = [0, 8, 0], sizes = [8, 1, 32], strides = [1, 1, 1]} : vector<8x9x32xf32> to vector<8x1x32xf32>
    %24 = vector.shape_cast %23 : vector<8x1x32xf32> to vector<8x32xf32>
    %25 = arith.truncf %24 : vector<8x32xf32> to vector<8x32xbf16>
    %c2 = arith.constant 2 : index
    %c0_14 = arith.constant 0 : index
    %c0_15 = arith.constant 0 : index
    %26 = vector.load %arg3[%c2, %c0_14, %c0_15] : memref<3x32x128xbf16, #tpu.memory_space<vmem>>, vector<1x32x128xbf16>
    %27 = vector.shape_cast %26 : vector<1x32x128xbf16> to vector<32x128xbf16>
    %cst_16 = arith.constant dense<0.000000e+00> : vector<8x128xf32>
    %28 = tpu.matmul %25, %27, %cst_16 {dimension_numbers = #tpu.dot_dimension_numbers<[1], [0], [0], [1], [0, 0, 1, 1], [], []>} : vector<8x32xbf16>, vector<32x128xbf16>, vector<8x128xf32> -> vector<8x128xf32>
    %29 = arith.addf %22, %28 : vector<8x128xf32>
    %c0_17 = arith.constant 0 : index
    %c0_18 = arith.constant 0 : index
    %30 = vector.load %arg4[%c0_17, %c0_18] : memref<1x128xf32, #tpu.memory_space<vmem>>, vector<1x128xf32>
    %31 = vector.broadcast %30 : vector<1x128xf32> to vector<8x128xf32>
    %32 = arith.addf %29, %31 : vector<8x128xf32>
    %c0_19 = arith.constant 0 : index
    %c0_20 = arith.constant 0 : index
    %33 = vector.load %arg6[%c0_19, %c0_20] : memref<8x128xf32, #tpu.memory_space<vmem>>, vector<8x128xf32>
    tpu.vector_store %arg6[%c0_19, %c0_20], %32 {strides = array<i32>} : memref<8x128xf32, #tpu.memory_space<vmem>>, vector<8x128xf32>,
    return
  }
  func.func @transform_0(%arg0: i32) -> (i32, i32, i32) {
    %c0_i32 = arith.constant 0 : i32
    %c0_i32_0 = arith.constant 0 : i32
    %c0_i32_1 = arith.constant 0 : i32
    return %arg0, %c0_i32, %c0_i32_0 : i32, i32, i32
  }
  func.func @transform_1(%arg0: i32) -> (i32, i32) {
    %c0_i32 = arith.constant 0 : i32
    %c0_i32_0 = arith.constant 0 : i32
    %c0_i32_1 = arith.constant 0 : i32
    return %c0_i32, %c0_i32_0 : i32, i32
  }
  func.func @transform_2(%arg0: i32) -> (i32, i32, i32) {
    %c0_i32 = arith.constant 0 : i32
    %c0_i32_0 = arith.constant 0 : i32
    %c0_i32_1 = arith.constant 0 : i32
    %c0_i32_2 = arith.constant 0 : i32
    return %c0_i32, %c0_i32_0, %c0_i32_1 : i32, i32, i32
  }
  func.func @transform_3(%arg0: i32) -> (i32, i32) {
    %c0_i32 = arith.constant 0 : i32
    %c0_i32_0 = arith.constant 0 : i32
    %c0_i32_1 = arith.constant 0 : i32
    return %c0_i32, %c0_i32_0 : i32, i32
  }
  func.func @transform_4(%arg0: i32) -> (i32, i32) {
    %c0_i32 = arith.constant 0 : i32
    %c0_i32_0 = arith.constant 0 : i32
    return %arg0, %c0_i32 : i32, i32
  }
  func.func @transform_5(%arg0: i32) -> (i32, i32) {
    %c0_i32 = arith.constant 0 : i32
    %c0_i32_0 = arith.constant 0 : i32
    return %arg0, %c0_i32 : i32, i32
  }
}

module attributes {stable_mosaic.version = 11 : i64} {
  func.func @_recon_kernel(%arg0: i32, %arg1: memref<8x9x32xf32, #tpu.memory_space<vmem>>, %arg2: memref<6x32xf32, #tpu.memory_space<vmem>>, %arg3: memref<3x32x128xbf16, #tpu.memory_space<vmem>>, %arg4: memref<1x128xf32, #tpu.memory_space<vmem>>, %arg5: memref<8x6xf32, #tpu.memory_space<vmem>>, %arg6: memref<8x128xf32, #tpu.memory_space<vmem>>) attributes {dimension_semantics = [#tpu.dimension_semantics<parallel>], iteration_bounds = array<i64: 2>, scalar_prefetch = 0 : i64, scratch_operands = 0 : i64, tpu.core_type = #tpu.core_type<tc>, window_params = [{transform_indices = @transform_0, window_bounds = array<i64: 8, 9, 32>}, {pipeline_mode = #tpu.pipeline_mode<synchronous>, transform_indices = @transform_1, window_bounds = array<i64: 6, 32>}, {pipeline_mode = #tpu.pipeline_mode<synchronous>, transform_indices = @transform_2, window_bounds = array<i64: 3, 32, 128>}, {pipeline_mode = #tpu.pipeline_mode<synchronous>, transform_indices = @transform_3, window_bounds = array<i64: 1, 128>}, {transform_indices = @transform_4, window_bounds = array<i64: 8, 6>}, {transform_indices = @transform_5, window_bounds = array<i64: 8, 128>}]} {
    %c0 = arith.constant 0 : index
    %c0_0 = arith.constant 0 : index
    %c0_1 = arith.constant 0 : index
    %0 = vector.load %arg1[%c0, %c0_0, %c0_1] : memref<8x9x32xf32, #tpu.memory_space<vmem>>, vector<8x9x32xf32>
    %1 = vector.extract_strided_slice %0 {offsets = [0, 0, 0], sizes = [8, 6, 32], strides = [1, 1, 1]} : vector<8x9x32xf32> to vector<8x6x32xf32>
    %c0_2 = arith.constant 0 : index
    %c0_3 = arith.constant 0 : index
    %2 = vector.load %arg2[%c0_2, %c0_3] : memref<6x32xf32, #tpu.memory_space<vmem>>, vector<6x32xf32>
    %3 = vector.shape_cast %2 : vector<6x32xf32> to vector<1x6x32xf32>
    %4 = vector.broadcast %3 : vector<1x6x32xf32> to vector<8x6x32xf32>
    %5 = arith.mulf %1, %4 : vector<8x6x32xf32>
    %cst = arith.constant dense<0.000000e+00> : vector<8x6xf32>
    %6 = vector.multi_reduction <add>, %5, %cst [2] : vector<8x6x32xf32> to vector<8x6xf32>
    %c0_4 = arith.constant 0 : index
    %c0_5 = arith.constant 0 : index
    %7 = vector.load %arg5[%c0_4, %c0_5] : memref<8x6xf32, #tpu.memory_space<vmem>>, vector<8x6xf32>
    tpu.vector_store %arg5[%c0_4, %c0_5], %6 {strides = array<i32>} : memref<8x6xf32, #tpu.memory_space<vmem>>, vector<8x6xf32>,
    %cst_6 = arith.constant 0.000000e+00 : f32
    %8 = vector.broadcast %cst_6 : f32 to vector<8x128xf32>
    %9 = vector.extract_strided_slice %0 {offsets = [0, 6, 0], sizes = [8, 1, 32], strides = [1, 1, 1]} : vector<8x9x32xf32> to vector<8x1x32xf32>
    %10 = vector.shape_cast %9 : vector<8x1x32xf32> to vector<8x32xf32>
    %11 = arith.truncf %10 : vector<8x32xf32> to vector<8x32xbf16>
    %c0_7 = arith.constant 0 : index
    %c0_8 = arith.constant 0 : index
    %c0_9 = arith.constant 0 : index
    %12 = vector.load %arg3[%c0_7, %c0_8, %c0_9] : memref<3x32x128xbf16, #tpu.memory_space<vmem>>, vector<1x32x128xbf16>
    %13 = vector.shape_cast %12 : vector<1x32x128xbf16> to vector<32x128xbf16>
    %cst_10 = arith.constant dense<0.000000e+00> : vector<8x128xf32>
    %14 = tpu.matmul %11, %13, %cst_10 {dimension_numbers = #tpu.dot_dimension_numbers<[1], [0], [0], [1], [0, 0, 1, 1], [], []>} : vector<8x32xbf16>, vector<32x128xbf16>, vector<8x128xf32> -> vector<8x128xf32>
    %15 = arith.addf %8, %14 : vector<8x128xf32>
    %16 = vector.extract_strided_slice %0 {offsets = [0, 7, 0], sizes = [8, 1, 32], strides = [1, 1, 1]} : vector<8x9x32xf32> to vector<8x1x32xf32>
    %17 = vector.shape_cast %16 : vector<8x1x32xf32> to vector<8x32xf32>
    %18 = arith.truncf %17 : vector<8x32xf32> to vector<8x32xbf16>
    %c1 = arith.constant 1 : index
    %c0_11 = arith.constant 0 : index
    %c0_12 = arith.constant 0 : index
    %19 = vector.load %arg3[%c1, %c0_11, %c0_12] : memref<3x32x128xbf16, #tpu.memory_space<vmem>>, vector<1x32x128xbf16>
    %20 = vector.shape_cast %19 : vector<1x32x128xbf16> to vector<32x128xbf16>
    %cst_13 = arith.constant dense<0.000000e+00> : vector<8x128xf32>
    %21 = tpu.matmul %18, %20, %cst_13 {dimension_numbers = #tpu.dot_dimension_numbers<[1], [0], [0], [1], [0, 0, 1, 1], [], []>} : vector<8x32xbf16>, vector<32x128xbf16>, vector<8x128xf32> -> vector<8x128xf32>
    %22 = arith.addf %15, %21 : vector<8x128xf32>
    %23 = vector.extract_strided_slice %0 {offsets = [0, 8, 0], sizes = [8, 1, 32], strides = [1, 1, 1]} : vector<8x9x32xf32> to vector<8x1x32xf32>
    %24 = vector.shape_cast %23 : vector<8x1x32xf32> to vector<8x32xf32>
    %25 = arith.truncf %24 : vector<8x32xf32> to vector<8x32xbf16>
    %c2 = arith.constant 2 : index
    %c0_14 = arith.constant 0 : index
    %c0_15 = arith.constant 0 : index
    %26 = vector.load %arg3[%c2, %c0_14, %c0_15] : memref<3x32x128xbf16, #tpu.memory_space<vmem>>, vector<1x32x128xbf16>
    %27 = vector.shape_cast %26 : vector<1x32x128xbf16> to vector<32x128xbf16>
    %cst_16 = arith.constant dense<0.000000e+00> : vector<8x128xf32>
    %28 = tpu.matmul %25, %27, %cst_16 {dimension_numbers = #tpu.dot_dimension_numbers<[1], [0], [0], [1], [0, 0, 1, 1], [], []>} : vector<8x32xbf16>, vector<32x128xbf16>, vector<8x128xf32> -> vector<8x128xf32>
    %29 = arith.addf %22, %28 : vector<8x128xf32>
    %c0_17 = arith.constant 0 : index
    %c0_18 = arith.constant 0 : index
    %30 = vector.load %arg4[%c0_17, %c0_18] : memref<1x128xf32, #tpu.memory_space<vmem>>, vector<1x128xf32>
    %31 = vector.broadcast %30 : vector<1x128xf32> to vector<8x128xf32>
    %32 = arith.addf %29, %31 : vector<8x128xf32>
    %c0_19 = arith.constant 0 : index
    %c0_20 = arith.constant 0 : index
    %33 = vector.load %arg6[%c0_19, %c0_20] : memref<8x128xf32, #tpu.memory_space<vmem>>, vector<8x128xf32>
    tpu.vector_store %arg6[%c0_19, %c0_20], %32 {strides = array<i32>} : memref<8x128xf32, #tpu.memory_space<vmem>>, vector<8x128xf32>,
    return
  }
  func.func @transform_0(%arg0: i32) -> (i32, i32, i32) {
    %c0_i32 = arith.constant 0 : i32
    %c0_i32_0 = arith.constant 0 : i32
    %c0_i32_1 = arith.constant 0 : i32
    return %arg0, %c0_i32, %c0_i32_0 : i32, i32, i32
  }
  func.func @transform_1(%arg0: i32) -> (i32, i32) {
    %c0_i32 = arith.constant 0 : i32
    %c0_i32_0 = arith.constant 0 : i32
    %c0_i32_1 = arith.constant 0 : i32
    return %c0_i32, %c0_i32_0 : i32, i32
  }
  func.func @transform_2(%arg0: i32) -> (i32, i32, i32) {
    %c0_i32 = arith.constant 0 : i32
    %c0_i32_0 = arith.constant 0 : i32
    %c0_i32_1 = arith.constant 0 : i32
    %c0_i32_2 = arith.constant 0 : i32
    return %c0_i32, %c0_i32_0, %c0_i32_1 : i32, i32, i32
  }
  func.func @transform_3(%arg0: i32) -> (i32, i32) {
    %c0_i32 = arith.constant 0 : i32
    %c0_i32_0 = arith.constant 0 : i32
    %c0_i32_1 = arith.constant 0 : i32
    return %c0_i32, %c0_i32_0 : i32, i32
  }
  func.func @transform_4(%arg0: i32) -> (i32, i32) {
    %c0_i32 = arith.constant 0 : i32
    %c0_i32_0 = arith.constant 0 : i32
    return %arg0, %c0_i32 : i32, i32
  }
  func.func @transform_5(%arg0: i32) -> (i32, i32) {
    %c0_i32 = arith.constant 0 : i32
    %c0_i32_0 = arith.constant 0 : i32
    return %arg0, %c0_i32 : i32, i32
  }
}

</mosaic_0001>

<bundles_post_ra>
// kernel: tpu_custom_call.1
= control target key start
LH: loop header
LB: loop body
LE: loop exit
PB: predicated region body
PF: predicated region fallthrough
CT: control target
= control target key end

     0   :  { %11 = vsyncpa [#allocation3], 0  ;;  %s1188_s0 = inlined_call_operand.vmem [shape: f32[16,9,32], index: 0, kind: input, shape index: {}]   ;;  %s1189_s1 = inlined_call_operand.vmem [shape: f32[6,32], index: 1, kind: input, shape index: {}]   ;;  %s1190_s2 = inlined_call_operand.vmem [shape: bf16[3,32,128], index: 2, kind: input, shape index: {}]   ;;  %s1191_s3 = inlined_call_operand.vmem [shape: f32[1,128], index: 3, kind: input, shape index: {}]   ;;  %s1192_s4 = inlined_call_operand.vmem [shape: f32[16,6], index: 4, kind: output, shape index: {0}]   ;;  %s1193_s5 = inlined_call_operand.hbm [shape: f32[16,128], index: 5, kind: output, shape index: {1}]  }
   0x1   :  { %13 = vsyncpa [#allocation3 + $0x1], 0  ;;  %s945_s18 = smov 0   ;;  %s947_s19 = smov 0  }
   0x2   :  { %s949_s20 = smov 0   ;;  %s951_s21 = smov 0  }
   0x3 LB: > { %s966_s22 = sadd.s32 4294967295, %s910_s21   ;;  %s736_s23 = sadd.s32 4294967294, %s910_s21   ;;  %s910_s21 = sphi %s951_s21, %s1199_s21   ;;  %s906_s20 = sphi %s949_s20, %s1198_s20   ;;  %s902_s19 = sphi %s947_s19, %s1197_s19   ;;  %s898_s18 = sphi %s945_s18, %s1196_s18  }
   0x4   : > { %s970_s24 = sadd.s32 1, %s910_s21   ;;  %s141_s25 = sadd.s32 1, %s906_s20 }
   0x5   : > { %s138_s26 = ssub.s32 %s910_s21, %s970_s24  ;;  %p151_p0 = scmp.ne.s32.totalorder %s906_s20, %s902_s19 }
   0x6   : > { %p139_p1 = scmp.eq.s32.totalorder %s138_s26, 0  ;;  %p152_p2 = scmp.eq.s32.totalorder %s966_s22, 1 }
   0x7   : > { %p157_p3 = scmp.ne.s32.totalorder %s902_s19, %s898_s18  ;;  %p158_p4 = scmp.eq.s32.totalorder %s736_s23, 1 }
   0x8   : > { %s981_s27 = scalar_select %p139_p1, %s906_s20, %s141_s25  }
   0x9   : > { %p983_p5 = por %p152_p2, %p151_p0  ;;  %p987_p6 = por %p158_p4, %p157_p3 }
   0xa   : > { %p739_p7 = scmp.ge.s32.totalorder %s910_s21, 1  ;;  %p195_p8 = scmp.lt.s32.totalorder %s910_s21, 3 }
   0xc   : > { %p196_p9 = pnand %p739_p7, %p195_p8 }
   0xd   : > { %v842_v0 = vld [vmem:[%s1190_s2 + $0x10] sm:$0xff] (!%p196_p9)   ;;  %v912_v1 = vmov (!%p196_p9), 0.0   ;;  %v843_v2 = vld [vmem:[%s1190_s2] sm:$0xff] (!%p196_p9)   ;;  %v844_v3 = vld [vmem:[%s1190_s2 + $0x18] sm:$0xff] (!%p196_p9)   ;;  %vm913_vm0 = vmmov (!%p196_p9), 0   ;;  %s741_s11 = sshll.u32 (!%p196_p9), %s966_s22, 3 }
   0xe   : > { %199 = sbr.rel (%p196_p9) target bundleno = 281 (0x119), region = 36  ;;  %777 = vmatprep.subr.bf16.mxu0 (!%p196_p9), %v912_v1  ;;  %785 = vmatprep.subr.bf16.mxu1 (!%p196_p9), %v912_v1  ;;  %v845_v4 = vld [vmem:[%s1190_s2 + $0x8] sm:$0xff] (!%p196_p9)   ;;  %p229_p10 = scmp.lt.s32.totalorder (!%p196_p9), %s741_s11, 15  ;;  %v1018_v5 = vld [vmem:[%s1189_s1] sm:$0x3f] (!%p196_p9)  ;;  %vm332_vm1 = vcmask (!%p196_p9), 1041409  }
   0xf   : > { %778 = vmatpush3.bf16.msra.mxu0 (!%p196_p9), %v842_v0  ;;  %781 = vmatprep.mubr.msk.bf16.mxu0 (!%p196_p9), %vm913_vm0, %v912_v1  ;;  %vm334_vm2 = vcmask (!%p196_p9), 1042434   ;;  %vm336_vm3 = vcmask (!%p196_p9), 1043459   ;;  %vm338_vm4 = vcmask (!%p196_p9), 1044484   ;;  %vm340_vm5 = vcmask (!%p196_p9), 1045509   ;;  %p235_p11 = scmp.lt.s32.totalorder (!%p196_p9), %s966_s22, 1  ;;  %s225_s13 = sand.u32 (!%p196_p9), 1, %s902_s19  }
  0x10   : > { %786 = vmatpush3.bf16.msra.mxu1 (!%p196_p9), %v843_v2  ;;  %779 = vmatprep.subr.bf16.mxu0 (!%p196_p9), %v912_v1  ;;  %vm342_vm6 = vcmask (!%p196_p9), 1046534   ;;  %vm344_vm7 = vcmask (!%p196_p9), 1047559   ;;  %vm409_vm8 = vcmask (!%p196_p9), 261120   ;;  %vm265_vm9 = vcmask (!%p196_p9), 259072   ;;  %s764_s17 = sshll.u32 (!%p196_p9), %s966_s22, 7  ;;  %s637_s7 = scalar_lea.sflag (!%p196_p9), [#allocation3], %s225_s13 }
  0x11   : > { %787 = vmatprep.subr.bf16.mxu1 (!%p196_p9), %v912_v1  ;;  %789 = vmatprep.mubr.msk.bf16.mxu1 (!%p196_p9), %vm913_vm0, %v912_v1  ;;  %vm347_vm10 = vcmask (!%p196_p9), 48128   ;;  %s1146_s6 = scalar_lea.hbm (!%p196_p9), %s1193_s5, %s764_s17 }
  0x13   : > { %780 = vmatpush3.bf16.msra.mxu0 (!%p196_p9), %v844_v3 }
  0x14   : > { %788 = vmatpush3.bf16.msra.mxu1 (!%p196_p9), %v845_v4  ;;  %793 = vmatprep.subr.bf16.mxu0 (!%p196_p9), %v912_v1 }
  0x15   : > { %s1201_s11 = smov (!%p229_p10, %s741_s11), 15 }
  0x16   : > { %s767_s14 = sshll.u32 %s1201_s11, 4 }
  0x17   : > { %s1023_s25 = scalar_lea.vmem %s1188_s0, %s767_s14  ;;  %s740_s14 = sshll.u32 %s225_s13, 3 }
  0x18   : > { %v240_v6 = vld [vmem:[%s1023_s25] sm:$0xff]  ;;  %v1027_v7 = vld [vmem:[%s1023_s25 + $0x10] sm:$0xff]  ;;  %v241_v34 = vld [vmem:[%s1023_s25 + $0x8] sm:$0x1]  ;;  %s236_s8 = scalar_select %p235_p11, %s966_s22, 1 }
  0x19   : > { %v244_v8 = vld [vmem:[%s1023_s25 + $0x20] sm:$0xff]  ;;  %v1031_v9 = vld [vmem:[%s1023_s25 + $0x30] sm:$0xff]  ;;  %v349_v12 = vpack.c.bf16 %v240_v6, %v240_v6  ;;  %v350_v13 = vpack.c.bf16 %v1027_v7, %v1027_v7  ;;  %v1042_v15 = vmul.f32 %v1018_v5, %v240_v6  ;;  %v243_v39 = vld [vmem:[%s1023_s25 + $0x18] sm:$0x1]  ;;  %v523_v60 = vpack.c.bf16 %v241_v34, %v241_v34  ;;  %s227_s23 = scalar_lea.vmem [#allocation2], %s740_s14 }
  0x1a   : > { %v1034_v10 = vld [vmem:[%s1023_s25 + $0x40] sm:$0xff]  ;;  %v1037_v11 = vld [vmem:[%s1023_s25 + $0x50] sm:$0xff]  ;;  %v351_v14 = vpack.c.bf16 %v244_v8, %v244_v8  ;;  %v352_v18 = vpack.c.bf16 %v1031_v9, %v1031_v9  ;;  %v1057_v21 = vmul.f32 %v1018_v5, %v244_v8  ;;  %v245_v44 = vld [vmem:[%s1023_s25 + $0x28] sm:$0x1]  ;;  %v524_v61 = vpack.c.bf16 %v243_v39, %v243_v39  ;;  %s744_s9 = sshll.u32 %s236_s8, 3  ;;  %s914_s8 = smov [#allocation2]  }
  0x1b   : > { %v1045_v16 = vld [vmem:[%s1023_s25 + $0x60] sm:$0xff]  ;;  %v1048_v17 = vld [vmem:[%s1023_s25 + $0x70] sm:$0xff]  ;;  %v353_v19 = vpack.c.bf16 %v1034_v10, %v1034_v10  ;;  %v354_v20 = vpack.c.bf16 %v1037_v11, %v1037_v11  ;;  %v374_v24 = vunpack.c.l.b16 %v349_v12  ;;  %v375_v25 = vunpack.c.l.b16 %v350_v13  ;;  %v247_v49 = vld [vmem:[%s1023_s25 + $0x38] sm:$0x1]  ;;  %s238_s12 = scalar_lea.vmem %s1192_s4, %s744_s9  ;;  %s852_s9 = sshll.u32 %s914_s8, 4  ;;  %s853_s9 = int_to_ptr.vmem [resolvable:$false] %s852_s9 }
  0x1c   : > { %v355_v22 = vpack.c.bf16 %v1045_v16, %v1045_v16  ;;  %v356_v23 = vpack.c.bf16 %v1048_v17, %v1048_v17  ;;  %v376_v26 = vunpack.c.l.b16 %v351_v14  ;;  %v377_v27 = vunpack.c.l.b16 %v352_v18  ;;  %v249_v54 = vld [vmem:[%s1023_s25 + $0x48] sm:$0x1]  ;;  %v251_v55 = vld [vmem:[%s1023_s25 + $0x58] sm:$0x1]  ;;  %v846_v14 = vld [vmem:[%s1190_s2 + $0x20] sm:$0xff]   ;;  %s854_s10 = scalar_lea.vmem %s853_s9, 256 }
  0x1d   : > { %v378_v28 = vunpack.c.l.b16 %v353_v19  ;;  %v379_v29 = vunpack.c.l.b16 %v354_v20  ;;  %v382_v32 = vrot.slane %v374_v24, 7  ;;  %v383_v33 = vrot.slane %v375_v25, 6  ;;  %v253_v58 = vld [vmem:[%s1023_s25 + $0x68] sm:$0x1]  ;;  %v255_v59 = vld [vmem:[%s1023_s25 + $0x78] sm:$0x1] }
  0x1e   : > { %v380_v30 = vunpack.c.l.b16 %v355_v22  ;;  %v381_v31 = vunpack.c.l.b16 %v356_v23  ;;  %v385_v35 = vrot.slane %v376_v26, 5  ;;  %v387_v36 = vrot.slane %v377_v27, 4  ;;  %v847_v34 = vld [vmem:[%s1190_s2 + $0x28] sm:$0xff]   ;;  %s653_s25 = sshll.u32 %s227_s23, 4  ;;  %s1148_s25 = int_to_ptr.vmem [resolvable:$true] %s653_s25 }
  0x1f   : > { %v389_v37 = vrot.slane %v378_v28, 3  ;;  %v391_v38 = vrot.slane %v379_v29, 2  ;;  %v384_v40 = vsel %vm332_vm1, %v383_v33, %v382_v32  ;;  %v453_v42 = vrot.slane %v374_v24, 6  ;;  %s848_s22 = scalar_lea.vmem %s1148_s25, 128  ;;  %p855_p1 = scmp.lt.s32.totalorder %s1148_s25, %s853_s9 }
  0x20   : > { %v393_v41 = vrot.slane %v380_v30, 1  ;;  %v454_v43 = vrot.slane %v375_v25, 5  ;;  %v386_v45 = vsel %vm334_vm2, %v385_v35, %v384_v40  ;;  %v456_v46 = vrot.slane %v376_v26, 4  ;;  %p849_p12 = scmp.ne.s32.totalorder %s1148_s25, %s848_s22  ;;  %p856_p2 = scmp.lt.s32.totalorder %s854_s10, %s848_s22 }
  0x21   : > { %v458_v47 = vrot.slane %v377_v27, 3  ;;  %v460_v48 = vrot.slane %v378_v28, 2  ;;  %v388_v50 = vsel %vm336_vm3, %v387_v36, %v386_v45  ;;  %v462_v52 = vrot.slane %v379_v29, 1 }
  0x22   : > { %v455_v51 = vsel %vm332_vm1, %v454_v43, %v453_v42  ;;  %v465_v53 = vrot.slane %v381_v31, 7  ;;  %v390_v56 = vsel %vm338_vm4, %v389_v37, %v388_v50  ;;  %v525_v0 = vpack.c.bf16 %v245_v44, %v245_v44  ;;  %p850_p13 = pnand %p849_p12, %p983_p5  ;;  %p857_p3 = por %p856_p2, %p855_p1 }
  0x23   : > { %v457_v57 = vsel %vm334_vm2, %v456_v46, %v455_v51  ;;  %v392_v62 = vsel %vm340_vm5, %v391_v38, %v390_v56  ;;  %v526_v2 = vpack.c.bf16 %v247_v49, %v247_v49  ;;  %v527_v6 = vpack.c.bf16 %v249_v54, %v249_v54 }
  0x24   : > { %v459_v63 = vsel %vm336_vm3, %v458_v47, %v457_v57  ;;  %v394_v3 = vsel %vm342_vm6, %v393_v41, %v392_v62  ;;  %v528_v8 = vpack.c.bf16 %v251_v55, %v251_v55  ;;  %v529_v18 = vpack.c.bf16 %v253_v58, %v253_v58  ;;  %p851_p0 = pneg %p850_p13 }
  0x25   : > { %v461_v4 = vsel %vm338_vm4, %v460_v48, %v459_v63  ;;  %v395_v12 = vsel %vm344_vm7, %v381_v31, %v394_v3  ;;  %v530_v19 = vpack.c.bf16 %v255_v59, %v255_v59  ;;  %v544_v23 = vunpack.c.l.b16 %v523_v60 }
  0x26   : > { %v463_v13 = vsel %vm340_vm5, %v462_v52, %v461_v4  ;;  %v396_v20 = vpack.c.b16 %v395_v12, %v395_v12  ;;  %v545_v24 = vunpack.c.l.b16 %v524_v61  ;;  %v546_v26 = vunpack.c.l.b16 %v525_v0  ;;  %p858_p4 = pnand %p857_p3, %p851_p0 }
  0x27   : > { %v464_v22 = vsel %vm342_vm6, %v380_v30, %v463_v13  ;;  %v547_v27 = vunpack.c.l.b16 %v526_v2  ;;  %v548_v28 = vunpack.c.l.b16 %v527_v6  ;;  %v549_v31 = vunpack.c.l.b16 %v528_v8 }
  0x28   : > { %v466_v25 = vsel %vm344_vm7, %v465_v53, %v464_v22  ;;  %782 = vmatmul.mubr.msk.bf16.vlgmr.msra.gmra.mrb[0].mxu0 %vm409_vm8, %v396_v20  ;;  %v550_v32 = vunpack.c.l.b16 %v529_v18  ;;  %v551_v33 = vunpack.c.l.b16 %v530_v19  ;;  %v552_v30 = vrot.slane %v545_v24, 7 }
  0x29   : > { %v467_v29 = vpack.c.b16 %v466_v25, %v466_v25  ;;  %794 = vmatpush3.bf16.msra.mxu0 %v846_v14  ;;  %797 = vmatprep.mubr.msk.bf16.mxu0 %vm913_vm0, %v912_v1  ;;  %v554_v35 = vrot.slane %v546_v26, 6  ;;  %v556_v36 = vrot.slane %v547_v27, 5  ;;  %v558_v37 = vrot.slane %v548_v28, 4 }
  0x2a   : > { %795 = vmatprep.subr.bf16.mxu0 %v912_v1  ;;  %v560_v38 = vrot.slane %v549_v31, 3  ;;  %v266_v39 = vsel %vm265_vm9, %v1042_v15, 0.0  ;;  %v553_v40 = vsel %vm332_vm1, %v552_v30, %v544_v23  ;;  %v272_v41 = vsel %vm265_vm9, %v1057_v21, 0.0 }
  0x2b   : > { %790 = vmatmul.mubr.msk.bf16.vlgmr.msra.gmra.mrb[0].mxu1 %vm409_vm8, %v467_v29  ;;  %267 = vadd.xlane.f32.xlu0 %v266_v39  ;;  %v258_v42 = vmul.f32 %v1018_v5, %v1027_v7  ;;  %v260_v43 = vmul.f32 %v1018_v5, %v1031_v9  ;;  %v555_v44 = vsel %vm334_vm2, %v554_v35, %v553_v40  ;;  %v562_v1 = vrot.slane %v550_v32, 2 }
  0x2c   : > { %v564_v45 = vrot.slane %v551_v33, 1  ;;  %273 = vadd.xlane.f32.xlu1 %v272_v41  ;;  %v261_v15 = vmul.f32 %v1018_v5, %v1034_v10  ;;  %v557_v46 = vsel %vm336_vm3, %v556_v36, %v555_v44  ;;  %v262_v7 = vmul.f32 %v1018_v5, %v1037_v11  ;;  %v762_v36 = vld [vmem:[%s1191_s3] ss:$0 sm:$0xff] }
  0x2d   : > { %796 = vmatpush3.bf16.msra.mxu0 %v847_v34  ;;  %v269_v47 = vsel %vm265_vm9, %v258_v42, 0.0  ;;  %v275_v21 = vsel %vm265_vm9, %v260_v43, 0.0  ;;  %v559_v9 = vsel %vm338_vm4, %v558_v37, %v557_v46  ;;  %v263_v50 = vmul.f32 %v1018_v5, %v1045_v16 }
  0x2e   : > { %v561_v48 = vsel %vm340_vm5, %v560_v38, %v559_v9  ;;  %v278_v10 = vsel %vm265_vm9, %v261_v15, 0.0  ;;  %v281_v52 = vsel %vm265_vm9, %v262_v7, 0.0  ;;  %v264_v11 = vmul.f32 %v1018_v5, %v1048_v17 }
  0x2f   : > { %270 = vadd.xlane.f32.xlu0 %v269_v47  ;;  %v563_v49 = vsel %vm342_vm6, %v562_v1, %v561_v48  ;;  %v284_v54 = vsel %vm265_vm9, %v263_v50, 0.0  ;;  %v298_v16 = vlaneseq }
  0x30   : > { %276 = vadd.xlane.f32.xlu1 %v275_v21  ;;  %v565_v51 = vsel %vm344_vm7, %v564_v45, %v563_v49  ;;  %v287_v55 = vsel %vm265_vm9, %v264_v11, 0.0 }
  0x31   : > { %v566_v53 = vpack.c.b16 %v565_v51, %v565_v51  ;;  %v299_v56 = vand.u32 127, %v298_v16  ;;  %v301_v57 = vshrl.u32 %v298_v16, 7 }
  0x33   : > { %279 = vadd.xlane.f32.xlu0 %v278_v10  ;;  %798 = vmatmul.mubr.msk.bf16.vlgmr.msra.gmra.mrb[4].mxu0 %vm409_vm8, %v566_v53  ;;  %v302_v58 = vsub.s32 %v299_v56, %v301_v57 }
  0x34   : > { %282 = vadd.xlane.f32.xlu1 %v281_v52 }
  0x37   : > { %285 = vadd.xlane.f32.xlu0 %v284_v54 }
  0x38   : > { %288 = vadd.xlane.f32.xlu1 %v287_v55 }
  0xb8   : > { %v268_v59 = vpop.xlane.xlu0 %267 }
  0xb9   : > { %v274_v60 = vpop.xlane.xlu1 %273  ;;  %v303_v5 = vrot.slane %v268_v59, %v302_v58 }
  0xba   : > { %v311_v17 = vrot.slane %v274_v60, %v302_v58 }
  0xbc   : > { %v271_v61 = vpop.xlane.xlu0 %270 }
  0xbd   : > { %v307_v62 = vrot.slane %v271_v61, %v302_v58  ;;  %v277_v63 = vpop.xlane.xlu1 %276 }
  0xbe   : > { %v315_v0 = vrot.slane %v277_v63, %v302_v58 }
  0xbf   : > { %v333_v2 = vsel %vm332_vm1, %v307_v62, %v303_v5 }
  0xc0   : > { %v335_v3 = vsel %vm334_vm2, %v311_v17, %v333_v2  ;;  %v280_v4 = vpop.xlane.xlu0 %279 }
  0xc1   : > { %v337_v6 = vsel %vm336_vm3, %v315_v0, %v335_v3  ;;  %v319_v8 = vrot.slane %v280_v4, %v302_v58  ;;  %v283_v12 = vpop.xlane.xlu1 %282 }
  0xc2   : > { %v323_v13 = vrot.slane %v283_v12, %v302_v58 }
  0xc3   : > { %v339_v14 = vsel %vm338_vm4, %v319_v8, %v337_v6 }
  0xc4   : > { %v341_v18 = vsel %vm340_vm5, %v323_v13, %v339_v14  ;;  %v286_v19 = vpop.xlane.xlu0 %285 }
  0xc5   : > { %v327_v20 = vrot.slane %v286_v19, %v302_v58  ;;  %v289_v22 = vpop.xlane.xlu1 %288 }
  0xc6   : > { %v331_v23 = vrot.slane %v289_v22, %v302_v58 }
  0xc7   : > { %v343_v24 = vsel %vm342_vm6, %v327_v20, %v341_v18 }
  0xc8   : > { %v345_v25 = vsel %vm344_vm7, %v331_v23, %v343_v24 }
  0xc9   : > { %348 = vst.msk [vmem:[%s238_s12] sm:$0xff] %vm347_vm10, %v345_v25 }
  0xfb   : > { %v447_v26 = vpop.f32.mrb[0].mxu0 }
  0xfc   : > { %v783_v27 = vpop.f32.mrb[1].mxu0 }
  0xfd   : > { %v450_v29 = vpop.f32.mrb[2].mxu0 }
  0xfe   : > { %v517_v28 = vpop.f32.mrb[0].mxu1  ;;  %v784_v32 = vpop.f32.mrb[3].mxu0 }
  0xff   : > { %v518_v31 = vadd.f32 %v517_v28, %v447_v26  ;;  %v791_v33 = vpop.f32.mrb[1].mxu1 }
 0x100   : > { %v520_v34 = vpop.f32.mrb[2].mxu1 }
 0x101   : > { %v792_v30 = vpop.f32.mrb[3].mxu1 }
 0x106   : > { %v616_v35 = vpop.f32.mrb[4].mxu0 }
 0x107   : > { %v622_v37 = vadd.f32 %v616_v35, %v518_v31  ;;  %v799_v38 = vpop.f32.mrb[5].mxu0 }
 0x108   : > { %v619_v39 = vpop.f32.mrb[6].mxu0 }
 0x109   : > { %v630_v40 = vadd.f32 %v762_v36, %v622_v37  ;;  %v800_v41 = vpop.f32.mrb[7].mxu0 }
 0x10b   : > { %631 = vst [vmem:[%s227_s23] sm:$0xff] %v630_v40 }
 0x10c   : > { %861 = shalt.err (!%p858_p4)
}
 0x10d   : > { %s862_s11 = scalar_lea.hbm %s1146_s6, 128  ;;  %s866_s14 = scalar_lea.hbm %s1193_s5, 256 }
 0x10e   : > { %p863_p7 = scmp.ne.s32.totalorder %s1146_s6, %s862_s11  ;;  %p867_p10 = scmp.lt.u32.totalorder %s1146_s6, %s1193_s5 }
 0x10f   : > { %p868_p11 = scmp.lt.u32.totalorder %s866_s14, %s862_s11  ;;  %p870_p13 = scmp.lt.u32.totalorder %s862_s11, %s1146_s6 }
 0x110   : > { %p864_p8 = pnand %p863_p7, %p983_p5 }
 0x111   : > { %p869_p12 = por %p868_p11, %p867_p10 }
 0x112   : > { %p865_p9 = pneg %p864_p8 }
 0x113   : > { %p871_p0 = por %p870_p13, %p869_p12 }
 0x115   : > { %p872_p1 = pnand %p871_p0, %p865_p9 }
 0x117   : > { %875 = shalt.err (!%p872_p1)
}
 0x118   : > { %801 = dma.vmem_to_hbm [thread:$0]  (%p983_p5), %s1148_s25, 128, %s1146_s6, %s637_s7  }
 0x119 PF: > { %p807_p2 = scmp.ge.s32.totalorder %s910_s21, 2  ;;  %s672_s17 = sand.u32 1, %s898_s18  }
 0x11a   : > { %s673_s23 = scalar_lea.sflag [#allocation3], %s672_s17 }
 0x11b   : > { %p804_p3 = pnand %p807_p2, %p987_p6 }
 0x11d   : > { %893 = dma.done.wait (!%p804_p3), %s673_s23, 128  }
 0x11e   : > { %895 = vsyncadd (!%p804_p3), %s673_s23, 4294967168  ;;  %p16_p4 = scmp.ge.s32.totalorder %s970_s24, 4   ;;  %s1196_s18 = smov %s902_s19 }
 0x11f   : > { %s1197_s19 = smov %s906_s20  ;;  %s1198_s20 = smov %s981_s27 }
 0x120   : > { %s1199_s21 = smov %s970_s24  ;;  %18 = sbr.rel (!%p16_p4) target bundleno = 3 (0x3), region = 85 }
 0x127   :  { %678 = vsyncpa [#allocation3], 1 }
 0x128   :  { %680 = vsyncpa [#allocation3 + $0x1], 1 }

// kernel: tpu_custom_call.1
= control target key start
LH: loop header
LB: loop body
LE: loop exit
PB: predicated region body
PF: predicated region fallthrough
CT: control target
= control target key end

     0   :  { %11 = vsyncpa [#allocation3], 0  ;;  %s1188_s0 = inlined_call_operand.vmem [shape: f32[16,9,32], index: 0, kind: input, shape index: {}]   ;;  %s1189_s1 = inlined_call_operand.vmem [shape: f32[6,32], index: 1, kind: input, shape index: {}]   ;;  %s1190_s2 = inlined_call_operand.vmem [shape: bf16[3,32,128], index: 2, kind: input, shape index: {}]   ;;  %s1191_s3 = inlined_call_operand.vmem [shape: f32[1,128], index: 3, kind: input, shape index: {}]   ;;  %s1192_s4 = inlined_call_operand.vmem [shape: f32[16,6], index: 4, kind: output, shape index: {0}]   ;;  %s1193_s5 = inlined_call_operand.hbm [shape: f32[16,128], index: 5, kind: output, shape index: {1}]  }
   0x1   :  { %13 = vsyncpa [#allocation3 + $0x1], 0  ;;  %s945_s18 = smov 0   ;;  %s947_s19 = smov 0  }
   0x2   :  { %s949_s20 = smov 0   ;;  %s951_s21 = smov 0  }
   0x3 LB: > { %s966_s22 = sadd.s32 4294967295, %s910_s21   ;;  %s736_s23 = sadd.s32 4294967294, %s910_s21   ;;  %s910_s21 = sphi %s951_s21, %s1199_s21   ;;  %s906_s20 = sphi %s949_s20, %s1198_s20   ;;  %s902_s19 = sphi %s947_s19, %s1197_s19   ;;  %s898_s18 = sphi %s945_s18, %s1196_s18  }
   0x4   : > { %s970_s24 = sadd.s32 1, %s910_s21   ;;  %s141_s25 = sadd.s32 1, %s906_s20 }
   0x5   : > { %s138_s26 = ssub.s32 %s910_s21, %s970_s24  ;;  %p151_p0 = scmp.ne.s32.totalorder %s906_s20, %s902_s19 }
   0x6   : > { %p139_p1 = scmp.eq.s32.totalorder %s138_s26, 0  ;;  %p152_p2 = scmp.eq.s32.totalorder %s966_s22, 1 }
   0x7   : > { %p157_p3 = scmp.ne.s32.totalorder %s902_s19, %s898_s18  ;;  %p158_p4 = scmp.eq.s32.totalorder %s736_s23, 1 }
   0x8   : > { %s981_s27 = scalar_select %p139_p1, %s906_s20, %s141_s25  }
   0x9   : > { %p983_p5 = por %p152_p2, %p151_p0  ;;  %p987_p6 = por %p158_p4, %p157_p3 }
   0xa   : > { %p739_p7 = scmp.ge.s32.totalorder %s910_s21, 1  ;;  %p195_p8 = scmp.lt.s32.totalorder %s910_s21, 3 }
   0xc   : > { %p196_p9 = pnand %p739_p7, %p195_p8 }
   0xd   : > { %v842_v0 = vld [vmem:[%s1190_s2 + $0x10] sm:$0xff] (!%p196_p9)   ;;  %v912_v1 = vmov (!%p196_p9), 0.0   ;;  %v843_v2 = vld [vmem:[%s1190_s2] sm:$0xff] (!%p196_p9)   ;;  %v844_v3 = vld [vmem:[%s1190_s2 + $0x18] sm:$0xff] (!%p196_p9)   ;;  %vm913_vm0 = vmmov (!%p196_p9), 0   ;;  %s741_s11 = sshll.u32 (!%p196_p9), %s966_s22, 3 }
   0xe   : > { %199 = sbr.rel (%p196_p9) target bundleno = 281 (0x119), region = 36  ;;  %777 = vmatprep.subr.bf16.mxu0 (!%p196_p9), %v912_v1  ;;  %785 = vmatprep.subr.bf16.mxu1 (!%p196_p9), %v912_v1  ;;  %v845_v4 = vld [vmem:[%s1190_s2 + $0x8] sm:$0xff] (!%p196_p9)   ;;  %p229_p10 = scmp.lt.s32.totalorder (!%p196_p9), %s741_s11, 15  ;;  %v1018_v5 = vld [vmem:[%s1189_s1] sm:$0x3f] (!%p196_p9)  ;;  %vm332_vm1 = vcmask (!%p196_p9), 1041409  }
   0xf   : > { %778 = vmatpush3.bf16.msra.mxu0 (!%p196_p9), %v842_v0  ;;  %781 = vmatprep.mubr.msk.bf16.mxu0 (!%p196_p9), %vm913_vm0, %v912_v1  ;;  %vm334_vm2 = vcmask (!%p196_p9), 1042434   ;;  %vm336_vm3 = vcmask (!%p196_p9), 1043459   ;;  %vm338_vm4 = vcmask (!%p196_p9), 1044484   ;;  %vm340_vm5 = vcmask (!%p196_p9), 1045509   ;;  %p235_p11 = scmp.lt.s32.totalorder (!%p196_p9), %s966_s22, 1  ;;  %s225_s13 = sand.u32 (!%p196_p9), 1, %s902_s19  }
  0x10   : > { %786 = vmatpush3.bf16.msra.mxu1 (!%p196_p9), %v843_v2  ;;  %779 = vmatprep.subr.bf16.mxu0 (!%p196_p9), %v912_v1  ;;  %vm342_vm6 = vcmask (!%p196_p9), 1046534   ;;  %vm344_vm7 = vcmask (!%p196_p9), 1047559   ;;  %vm409_vm8 = vcmask (!%p196_p9), 261120   ;;  %vm265_vm9 = vcmask (!%p196_p9), 259072   ;;  %s764_s17 = sshll.u32 (!%p196_p9), %s966_s22, 7  ;;  %s637_s7 = scalar_lea.sflag (!%p196_p9), [#allocation3], %s225_s13 }
  0x11   : > { %787 = vmatprep.subr.bf16.mxu1 (!%p196_p9), %v912_v1  ;;  %789 = vmatprep.mubr.msk.bf16.mxu1 (!%p196_p9), %vm913_vm0, %v912_v1  ;;  %vm347_vm10 = vcmask (!%p196_p9), 48128   ;;  %s1146_s6 = scalar_lea.hbm (!%p196_p9), %s1193_s5, %s764_s17 }
  0x13   : > { %780 = vmatpush3.bf16.msra.mxu0 (!%p196_p9), %v844_v3 }
  0x14   : > { %788 = vmatpush3.bf16.msra.mxu1 (!%p196_p9), %v845_v4  ;;  %793 = vmatprep.subr.bf16.mxu0 (!%p196_p9), %v912_v1 }
  0x15   : > { %s1201_s11 = smov (!%p229_p10, %s741_s11), 15 }
  0x16   : > { %s767_s14 = sshll.u32 %s1201_s11, 4 }
  0x17   : > { %s1023_s25 = scalar_lea.vmem %s1188_s0, %s767_s14  ;;  %s740_s14 = sshll.u32 %s225_s13, 3 }
  0x18   : > { %v240_v6 = vld [vmem:[%s1023_s25] sm:$0xff]  ;;  %v1027_v7 = vld [vmem:[%s1023_s25 + $0x10] sm:$0xff]  ;;  %v241_v34 = vld [vmem:[%s1023_s25 + $0x8] sm:$0x1]  ;;  %s236_s8 = scalar_select %p235_p11, %s966_s22, 1 }
  0x19   : > { %v244_v8 = vld [vmem:[%s1023_s25 + $0x20] sm:$0xff]  ;;  %v1031_v9 = vld [vmem:[%s1023_s25 + $0x30] sm:$0xff]  ;;  %v349_v12 = vpack.c.bf16 %v240_v6, %v240_v6  ;;  %v350_v13 = vpack.c.bf16 %v1027_v7, %v1027_v7  ;;  %v1042_v15 = vmul.f32 %v1018_v5, %v240_v6  ;;  %v243_v39 = vld [vmem:[%s1023_s25 + $0x18] sm:$0x1]  ;;  %v523_v60 = vpack.c.bf16 %v241_v34, %v241_v34  ;;  %s227_s23 = scalar_lea.vmem [#allocation2], %s740_s14 }
  0x1a   : > { %v1034_v10 = vld [vmem:[%s1023_s25 + $0x40] sm:$0xff]  ;;  %v1037_v11 = vld [vmem:[%s1023_s25 + $0x50] sm:$0xff]  ;;  %v351_v14 = vpack.c.bf16 %v244_v8, %v244_v8  ;;  %v352_v18 = vpack.c.bf16 %v1031_v9, %v1031_v9  ;;  %v1057_v21 = vmul.f32 %v1018_v5, %v244_v8  ;;  %v245_v44 = vld [vmem:[%s1023_s25 + $0x28] sm:$0x1]  ;;  %v524_v61 = vpack.c.bf16 %v243_v39, %v243_v39  ;;  %s744_s9 = sshll.u32 %s236_s8, 3  ;;  %s914_s8 = smov [#allocation2]  }
  0x1b   : > { %v1045_v16 = vld [vmem:[%s1023_s25 + $0x60] sm:$0xff]  ;;  %v1048_v17 = vld [vmem:[%s1023_s25 + $0x70] sm:$0xff]  ;;  %v353_v19 = vpack.c.bf16 %v1034_v10, %v1034_v10  ;;  %v354_v20 = vpack.c.bf16 %v1037_v11, %v1037_v11  ;;  %v374_v24 = vunpack.c.l.b16 %v349_v12  ;;  %v375_v25 = vunpack.c.l.b16 %v350_v13  ;;  %v247_v49 = vld [vmem:[%s1023_s25 + $0x38] sm:$0x1]  ;;  %s238_s12 = scalar_lea.vmem %s1192_s4, %s744_s9  ;;  %s852_s9 = sshll.u32 %s914_s8, 4  ;;  %s853_s9 = int_to_ptr.vmem [resolvable:$false] %s852_s9 }
  0x1c   : > { %v355_v22 = vpack.c.bf16 %v1045_v16, %v1045_v16  ;;  %v356_v23 = vpack.c.bf16 %v1048_v17, %v1048_v17  ;;  %v376_v26 = vunpack.c.l.b16 %v351_v14  ;;  %v377_v27 = vunpack.c.l.b16 %v352_v18  ;;  %v249_v54 = vld [vmem:[%s1023_s25 + $0x48] sm:$0x1]  ;;  %v251_v55 = vld [vmem:[%s1023_s25 + $0x58] sm:$0x1]  ;;  %v846_v14 = vld [vmem:[%s1190_s2 + $0x20] sm:$0xff]   ;;  %s854_s10 = scalar_lea.vmem %s853_s9, 256 }
  0x1d   : > { %v378_v28 = vunpack.c.l.b16 %v353_v19  ;;  %v379_v29 = vunpack.c.l.b16 %v354_v20  ;;  %v382_v32 = vrot.slane %v374_v24, 7  ;;  %v383_v33 = vrot.slane %v375_v25, 6  ;;  %v253_v58 = vld [vmem:[%s1023_s25 + $0x68] sm:$0x1]  ;;  %v255_v59 = vld [vmem:[%s1023_s25 + $0x78] sm:$0x1] }
  0x1e   : > { %v380_v30 = vunpack.c.l.b16 %v355_v22  ;;  %v381_v31 = vunpack.c.l.b16 %v356_v23  ;;  %v385_v35 = vrot.slane %v376_v26, 5  ;;  %v387_v36 = vrot.slane %v377_v27, 4  ;;  %v847_v34 = vld [vmem:[%s1190_s2 + $0x28] sm:$0xff]   ;;  %s653_s25 = sshll.u32 %s227_s23, 4  ;;  %s1148_s25 = int_to_ptr.vmem [resolvable:$true] %s653_s25 }
  0x1f   : > { %v389_v37 = vrot.slane %v378_v28, 3  ;;  %v391_v38 = vrot.slane %v379_v29, 2  ;;  %v384_v40 = vsel %vm332_vm1, %v383_v33, %v382_v32  ;;  %v453_v42 = vrot.slane %v374_v24, 6  ;;  %s848_s22 = scalar_lea.vmem %s1148_s25, 128  ;;  %p855_p1 = scmp.lt.s32.totalorder %s1148_s25, %s853_s9 }
  0x20   : > { %v393_v41 = vrot.slane %v380_v30, 1  ;;  %v454_v43 = vrot.slane %v375_v25, 5  ;;  %v386_v45 = vsel %vm334_vm2, %v385_v35, %v384_v40  ;;  %v456_v46 = vrot.slane %v376_v26, 4  ;;  %p849_p12 = scmp.ne.s32.totalorder %s1148_s25, %s848_s22  ;;  %p856_p2 = scmp.lt.s32.totalorder %s854_s10, %s848_s22 }
  0x21   : > { %v458_v47 = vrot.slane %v377_v27, 3  ;;  %v460_v48 = vrot.slane %v378_v28, 2  ;;  %v388_v50 = vsel %vm336_vm3, %v387_v36, %v386_v45  ;;  %v462_v52 = vrot.slane %v379_v29, 1 }
  0x22   : > { %v455_v51 = vsel %vm332_vm1, %v454_v43, %v453_v42  ;;  %v465_v53 = vrot.slane %v381_v31, 7  ;;  %v390_v56 = vsel %vm338_vm4, %v389_v37, %v388_v50  ;;  %v525_v0 = vpack.c.bf16 %v245_v44, %v245_v44  ;;  %p850_p13 = pnand %p849_p12, %p983_p5  ;;  %p857_p3 = por %p856_p2, %p855_p1 }
  0x23   : > { %v457_v57 = vsel %vm334_vm2, %v456_v46, %v455_v51  ;;  %v392_v62 = vsel %vm340_vm5, %v391_v38, %v390_v56  ;;  %v526_v2 = vpack.c.bf16 %v247_v49, %v247_v49  ;;  %v527_v6 = vpack.c.bf16 %v249_v54, %v249_v54 }
  0x24   : > { %v459_v63 = vsel %vm336_vm3, %v458_v47, %v457_v57  ;;  %v394_v3 = vsel %vm342_vm6, %v393_v41, %v392_v62  ;;  %v528_v8 = vpack.c.bf16 %v251_v55, %v251_v55  ;;  %v529_v18 = vpack.c.bf16 %v253_v58, %v253_v58  ;;  %p851_p0 = pneg %p850_p13 }
  0x25   : > { %v461_v4 = vsel %vm338_vm4, %v460_v48, %v459_v63  ;;  %v395_v12 = vsel %vm344_vm7, %v381_v31, %v394_v3  ;;  %v530_v19 = vpack.c.bf16 %v255_v59, %v255_v59  ;;  %v544_v23 = vunpack.c.l.b16 %v523_v60 }
  0x26   : > { %v463_v13 = vsel %vm340_vm5, %v462_v52, %v461_v4  ;;  %v396_v20 = vpack.c.b16 %v395_v12, %v395_v12  ;;  %v545_v24 = vunpack.c.l.b16 %v524_v61  ;;  %v546_v26 = vunpack.c.l.b16 %v525_v0  ;;  %p858_p4 = pnand %p857_p3, %p851_p0 }
  0x27   : > { %v464_v22 = vsel %vm342_vm6, %v380_v30, %v463_v13  ;;  %v547_v27 = vunpack.c.l.b16 %v526_v2  ;;  %v548_v28 = vunpack.c.l.b16 %v527_v6  ;;  %v549_v31 = vunpack.c.l.b16 %v528_v8 }
  0x28   : > { %v466_v25 = vsel %vm344_vm7, %v465_v53, %v464_v22  ;;  %782 = vmatmul.mubr.msk.bf16.vlgmr.msra.gmra.mrb[0].mxu0 %vm409_vm8, %v396_v20  ;;  %v550_v32 = vunpack.c.l.b16 %v529_v18  ;;  %v551_v33 = vunpack.c.l.b16 %v530_v19  ;;  %v552_v30 = vrot.slane %v545_v24, 7 }
  0x29   : > { %v467_v29 = vpack.c.b16 %v466_v25, %v466_v25  ;;  %794 = vmatpush3.bf16.msra.mxu0 %v846_v14  ;;  %797 = vmatprep.mubr.msk.bf16.mxu0 %vm913_vm0, %v912_v1  ;;  %v554_v35 = vrot.slane %v546_v26, 6  ;;  %v556_v36 = vrot.slane %v547_v27, 5  ;;  %v558_v37 = vrot.slane %v548_v28, 4 }
  0x2a   : > { %795 = vmatprep.subr.bf16.mxu0 %v912_v1  ;;  %v560_v38 = vrot.slane %v549_v31, 3  ;;  %v266_v39 = vsel %vm265_vm9, %v1042_v15, 0.0  ;;  %v553_v40 = vsel %vm332_vm1, %v552_v30, %v544_v23  ;;  %v272_v41 = vsel %vm265_vm9, %v1057_v21, 0.0 }
  0x2b   : > { %790 = vmatmul.mubr.msk.bf16.vlgmr.msra.gmra.mrb[0].mxu1 %vm409_vm8, %v467_v29  ;;  %267 = vadd.xlane.f32.xlu0 %v266_v39  ;;  %v258_v42 = vmul.f32 %v1018_v5, %v1027_v7  ;;  %v260_v43 = vmul.f32 %v1018_v5, %v1031_v9  ;;  %v555_v44 = vsel %vm334_vm2, %v554_v35, %v553_v40  ;;  %v562_v1 = vrot.slane %v550_v32, 2 }
  0x2c   : > { %v564_v45 = vrot.slane %v551_v33, 1  ;;  %273 = vadd.xlane.f32.xlu1 %v272_v41  ;;  %v261_v15 = vmul.f32 %v1018_v5, %v1034_v10  ;;  %v557_v46 = vsel %vm336_vm3, %v556_v36, %v555_v44  ;;  %v262_v7 = vmul.f32 %v1018_v5, %v1037_v11  ;;  %v762_v36 = vld [vmem:[%s1191_s3] ss:$0 sm:$0xff] }
  0x2d   : > { %796 = vmatpush3.bf16.msra.mxu0 %v847_v34  ;;  %v269_v47 = vsel %vm265_vm9, %v258_v42, 0.0  ;;  %v275_v21 = vsel %vm265_vm9, %v260_v43, 0.0  ;;  %v559_v9 = vsel %vm338_vm4, %v558_v37, %v557_v46  ;;  %v263_v50 = vmul.f32 %v1018_v5, %v1045_v16 }
  0x2e   : > { %v561_v48 = vsel %vm340_vm5, %v560_v38, %v559_v9  ;;  %v278_v10 = vsel %vm265_vm9, %v261_v15, 0.0  ;;  %v281_v52 = vsel %vm265_vm9, %v262_v7, 0.0  ;;  %v264_v11 = vmul.f32 %v1018_v5, %v1048_v17 }
  0x2f   : > { %270 = vadd.xlane.f32.xlu0 %v269_v47  ;;  %v563_v49 = vsel %vm342_vm6, %v562_v1, %v561_v48  ;;  %v284_v54 = vsel %vm265_vm9, %v263_v50, 0.0  ;;  %v298_v16 = vlaneseq }
  0x30   : > { %276 = vadd.xlane.f32.xlu1 %v275_v21  ;;  %v565_v51 = vsel %vm344_vm7, %v564_v45, %v563_v49  ;;  %v287_v55 = vsel %vm265_vm9, %v264_v11, 0.0 }
  0x31   : > { %v566_v53 = vpack.c.b16 %v565_v51, %v565_v51  ;;  %v299_v56 = vand.u32 127, %v298_v16  ;;  %v301_v57 = vshrl.u32 %v298_v16, 7 }
  0x33   : > { %279 = vadd.xlane.f32.xlu0 %v278_v10  ;;  %798 = vmatmul.mubr.msk.bf16.vlgmr.msra.gmra.mrb[4].mxu0 %vm409_vm8, %v566_v53  ;;  %v302_v58 = vsub.s32 %v299_v56, %v301_v57 }
  0x34   : > { %282 = vadd.xlane.f32.xlu1 %v281_v52 }
  0x37   : > { %285 = vadd.xlane.f32.xlu0 %v284_v54 }
  0x38   : > { %288 = vadd.xlane.f32.xlu1 %v287_v55 }
  0xb8   : > { %v268_v59 = vpop.xlane.xlu0 %267 }
  0xb9   : > { %v274_v60 = vpop.xlane.xlu1 %273  ;;  %v303_v5 = vrot.slane %v268_v59, %v302_v58 }
  0xba   : > { %v311_v17 = vrot.slane %v274_v60, %v302_v58 }
  0xbc   : > { %v271_v61 = vpop.xlane.xlu0 %270 }
  0xbd   : > { %v307_v62 = vrot.slane %v271_v61, %v302_v58  ;;  %v277_v63 = vpop.xlane.xlu1 %276 }
  0xbe   : > { %v315_v0 = vrot.slane %v277_v63, %v302_v58 }
  0xbf   : > { %v333_v2 = vsel %vm332_vm1, %v307_v62, %v303_v5 }
  0xc0   : > { %v335_v3 = vsel %vm334_vm2, %v311_v17, %v333_v2  ;;  %v280_v4 = vpop.xlane.xlu0 %279 }
  0xc1   : > { %v337_v6 = vsel %vm336_vm3, %v315_v0, %v335_v3  ;;  %v319_v8 = vrot.slane %v280_v4, %v302_v58  ;;  %v283_v12 = vpop.xlane.xlu1 %282 }
  0xc2   : > { %v323_v13 = vrot.slane %v283_v12, %v302_v58 }
  0xc3   : > { %v339_v14 = vsel %vm338_vm4, %v319_v8, %v337_v6 }
  0xc4   : > { %v341_v18 = vsel %vm340_vm5, %v323_v13, %v339_v14  ;;  %v286_v19 = vpop.xlane.xlu0 %285 }
  0xc5   : > { %v327_v20 = vrot.slane %v286_v19, %v302_v58  ;;  %v289_v22 = vpop.xlane.xlu1 %288 }
  0xc6   : > { %v331_v23 = vrot.slane %v289_v22, %v302_v58 }
  0xc7   : > { %v343_v24 = vsel %vm342_vm6, %v327_v20, %v341_v18 }
  0xc8   : > { %v345_v25 = vsel %vm344_vm7, %v331_v23, %v343_v24 }
  0xc9   : > { %348 = vst.msk [vmem:[%s238_s12] sm:$0xff] %vm347_vm10, %v345_v25 }
  0xfb   : > { %v447_v26 = vpop.f32.mrb[0].mxu0 }
  0xfc   : > { %v783_v27 = vpop.f32.mrb[1].mxu0 }
  0xfd   : > { %v450_v29 = vpop.f32.mrb[2].mxu0 }
  0xfe   : > { %v517_v28 = vpop.f32.mrb[0].mxu1  ;;  %v784_v32 = vpop.f32.mrb[3].mxu0 }
  0xff   : > { %v518_v31 = vadd.f32 %v517_v28, %v447_v26  ;;  %v791_v33 = vpop.f32.mrb[1].mxu1 }
 0x100   : > { %v520_v34 = vpop.f32.mrb[2].mxu1 }
 0x101   : > { %v792_v30 = vpop.f32.mrb[3].mxu1 }
 0x106   : > { %v616_v35 = vpop.f32.mrb[4].mxu0 }
 0x107   : > { %v622_v37 = vadd.f32 %v616_v35, %v518_v31  ;;  %v799_v38 = vpop.f32.mrb[5].mxu0 }
 0x108   : > { %v619_v39 = vpop.f32.mrb[6].mxu0 }
 0x109   : > { %v630_v40 = vadd.f32 %v762_v36, %v622_v37  ;;  %v800_v41 = vpop.f32.mrb[7].mxu0 }
 0x10b   : > { %631 = vst [vmem:[%s227_s23] sm:$0xff] %v630_v40 }
 0x10c   : > { %861 = shalt.err (!%p858_p4)
}
 0x10d   : > { %s862_s11 = scalar_lea.hbm %s1146_s6, 128  ;;  %s866_s14 = scalar_lea.hbm %s1193_s5, 256 }
 0x10e   : > { %p863_p7 = scmp.ne.s32.totalorder %s1146_s6, %s862_s11  ;;  %p867_p10 = scmp.lt.u32.totalorder %s1146_s6, %s1193_s5 }
 0x10f   : > { %p868_p11 = scmp.lt.u32.totalorder %s866_s14, %s862_s11  ;;  %p870_p13 = scmp.lt.u32.totalorder %s862_s11, %s1146_s6 }
 0x110   : > { %p864_p8 = pnand %p863_p7, %p983_p5 }
 0x111   : > { %p869_p12 = por %p868_p11, %p867_p10 }
 0x112   : > { %p865_p9 = pneg %p864_p8 }
 0x113   : > { %p871_p0 = por %p870_p13, %p869_p12 }
 0x115   : > { %p872_p1 = pnand %p871_p0, %p865_p9 }
 0x117   : > { %875 = shalt.err (!%p872_p1)
}
 0x118   : > { %801 = dma.vmem_to_hbm [thread:$0]  (%p983_p5), %s1148_s25, 128, %s1146_s6, %s637_s7  }
 0x119 PF: > { %p807_p2 = scmp.ge.s32.totalorder %s910_s21, 2  ;;  %s672_s17 = sand.u32 1, %s898_s18  }
 0x11a   : > { %s673_s23 = scalar_lea.sflag [#allocation3], %s672_s17 }
 0x11b   : > { %p804_p3 = pnand %p807_p2, %p987_p6 }
 0x11d   : > { %893 = dma.done.wait (!%p804_p3), %s673_s23, 128  }
 0x11e   : > { %895 = vsyncadd (!%p804_p3), %s673_s23, 4294967168  ;;  %p16_p4 = scmp.ge.s32.totalorder %s970_s24, 4   ;;  %s1196_s18 = smov %s902_s19 }
 0x11f   : > { %s1197_s19 = smov %s906_s20  ;;  %s1198_s20 = smov %s981_s27 }
 0x120   : > { %s1199_s21 = smov %s970_s24  ;;  %18 = sbr.rel (!%p16_p4) target bundleno = 3 (0x3), region = 85 }
 0x127   :  { %678 = vsyncpa [#allocation3], 1 }
 0x128   :  { %680 = vsyncpa [#allocation3 + $0x1], 1 }

</bundles_post_ra>
